<compile_context>
chip_gen: v7x
topology: tpu7x:2x2x1
jax: 0.10.0
libtpu: 0.0.40
codegen_flags: <defaults>
</compile_context>

<pallas_src>
from functools import partial

import jax
import jax.numpy as jnp
from jax.experimental import pallas as pl
from jax.experimental.pallas import tpu as pltpu

INPUT_SIZE = 784           # logical in/out features
CODE_SIZE = 64             # logical bottleneck
HIDDEN_SIZE = 128
CODE_PAD = 128             # bottleneck padded to one native 128 tile
OUT_PAD = 896              # 7 * 128: lane-dense logits width for the matmul
NEG_BIAS = -1e30           # bias for padded logit columns -> softmax weight 0
TB_DEFAULT = 512           # max batch tile (rows per grid step)


def _round_up(n, m):
    return (n + m - 1) // m * m


def _choose_tile(batch, tb_max=TB_DEFAULT):
    """Pick a batch tile: multiple of 16 (bf16 sublanes), <= tb_max, with
    <1 tile of padding waste (e.g. B=520 -> tb=272, Bp=544, not Bp=1024)."""
    n_tiles = max(1, pl.cdiv(batch, tb_max))
    tb = _round_up(pl.cdiv(batch, n_tiles), 16)
    bp = _round_up(batch, tb)
    return tb, bp


def _mautoencoder_kernel(x_ref, w1_ref, b1_ref, w2_ref, b2_ref, w3_ref, b3_ref, o_ref):
    # Cast x to bf16 on the VPU (VALU has huge slack; saves an HBM cast pass).
    x = x_ref[...].astype(jnp.bfloat16)

    # Layer 1: (TB, 784) bf16 @ (784, 128) bf16 -> f32, + bias, ReLU.
    # (Code dim zero-padded 64 -> 128; padded cols stay exactly 0.)
    h1 = jnp.dot(x, w1_ref[...], preferred_element_type=jnp.float32)
    h1 = jnp.maximum(h1 + b1_ref[...], 0.0)

    # Layer 2: (TB, 128) @ (128, 128) -> f32, + bias, ReLU.
    h2 = jnp.dot(h1.astype(jnp.bfloat16), w2_ref[...],
                 preferred_element_type=jnp.float32)
    h2 = jnp.maximum(h2 + b2_ref[...], 0.0)

    # Layer 3: (TB, 128) @ (128, 896) -> f32 logits.  Columns 784..895 carry a
    # -1e30 bias so exp() makes them exactly 0 in the softmax.
    logits = jnp.dot(h2.astype(jnp.bfloat16), w3_ref[...],
                     preferred_element_type=jnp.float32)
    logits = logits + b3_ref[...]

    # Softmax over the (padded) feature axis; divide on the EUP slot.
    m = jnp.max(logits, axis=-1, keepdims=True)
    e = jnp.exp(logits - m)
    denom = jnp.sum(e, axis=-1, keepdims=True)
    inv = pl.reciprocal(denom, approx=True)

    # Store only the 784 real columns, in bf16 (halves the writeback stream).
    o_ref[...] = (e[:, :INPUT_SIZE] * inv).astype(o_ref.dtype)


def _prepare_params(params):
    """Cast weights to bf16, zero-pad code dim 64->128, pad output dim 784->896
    (extra logit columns get a -1e30 bias so softmax ignores them exactly)."""
    w1 = jnp.pad(params["w1"].astype(jnp.bfloat16),
                 ((0, 0), (0, CODE_PAD - CODE_SIZE)))
    b1 = jnp.pad(params["b1"].astype(jnp.float32),
                 ((0, 0), (0, CODE_PAD - CODE_SIZE)))
    w2 = jnp.pad(params["w2"].astype(jnp.bfloat16),
                 ((0, CODE_PAD - CODE_SIZE), (0, 0)))
    b2 = params["b2"].astype(jnp.float32)
    w3 = jnp.pad(params["w3"].astype(jnp.bfloat16),
                 ((0, 0), (0, OUT_PAD - INPUT_SIZE)))
    b3 = jnp.pad(params["b3"].astype(jnp.float32),
                 ((0, 0), (0, OUT_PAD - INPUT_SIZE)),
                 constant_values=NEG_BIAS)
    return w1, b1, w2, b2, w3, b3


@partial(jax.jit, static_argnames=("tb_max",))
def mautoencoder_forward(x, params, tb_max=TB_DEFAULT):
    """x: (B, 784) float. params: (in, out)-layout weights / (1, out) biases.
    Returns bf16 softmax probabilities of shape (B, 784)."""
    B = x.shape[0]
    tb, Bp = _choose_tile(B, tb_max)

    if Bp != B:                      # only pad when necessary (skip extra pass)
        x = jnp.pad(x, ((0, Bp - B), (0, 0)))

    w1, b1, w2, b2, w3, b3 = _prepare_params(params)

    grid = (Bp // tb,)
    weight_bytes = 2 * (INPUT_SIZE * CODE_PAD + CODE_PAD * HIDDEN_SIZE
                        + HIDDEN_SIZE * OUT_PAD)
    cost = pl.CostEstimate(
        flops=2 * Bp * (INPUT_SIZE * CODE_PAD + CODE_PAD * HIDDEN_SIZE
                        + HIDDEN_SIZE * OUT_PAD),
        transcendentals=Bp * OUT_PAD,
        bytes_accessed=Bp * INPUT_SIZE * x.dtype.itemsize   # x in caller dtype
                       + Bp * INPUT_SIZE * 2                # bf16 output
                       + weight_bytes
                       + 4 * (CODE_PAD + HIDDEN_SIZE + OUT_PAD),
    )

    out = pl.pallas_call(
        _mautoencoder_kernel,
        out_shape=jax.ShapeDtypeStruct((Bp, INPUT_SIZE), jnp.bfloat16),
        grid=grid,
        in_specs=[
            pl.BlockSpec((tb, INPUT_SIZE), lambda i: (i, 0)),          # x tile
            pl.BlockSpec((INPUT_SIZE, CODE_PAD), lambda i: (0, 0)),    # w1 (resident)
            pl.BlockSpec((1, CODE_PAD), lambda i: (0, 0)),             # b1
            pl.BlockSpec((CODE_PAD, HIDDEN_SIZE), lambda i: (0, 0)),   # w2
            pl.BlockSpec((1, HIDDEN_SIZE), lambda i: (0, 0)),          # b2
            pl.BlockSpec((HIDDEN_SIZE, OUT_PAD), lambda i: (0, 0)),    # w3
            pl.BlockSpec((1, OUT_PAD), lambda i: (0, 0)),              # b3
        ],
        out_specs=pl.BlockSpec((tb, INPUT_SIZE), lambda i: (i, 0)),
        compiler_params=pltpu.CompilerParams(
            dimension_semantics=("parallel",),
            vmem_limit_bytes=32 * 1024 * 1024),
        cost_estimate=cost,
    )(x, w1, b1, w2, b2, w3, b3)

    if Bp != B:
        out = out[:B]
    return out


def init_params(key):
    """Deterministic init mimicking nn.Linear (uniform +-1/sqrt(fan_in)).
    Weights are stored as (in_features, out_features) — i.e. W.T of PyTorch."""
    ks = jax.random.split(key, 6)

    def linear(kw, kb, fan_in, fan_out):
        bound = 1.0 / jnp.sqrt(fan_in)
        w = jax.random.uniform(kw, (fan_in, fan_out), jnp.float32, -bound, bound)
        b = jax.random.uniform(kb, (1, fan_out), jnp.float32, -bound, bound)
        return w, b

    w1, b1 = linear(ks[0], ks[1], INPUT_SIZE, CODE_SIZE)
    w2, b2 = linear(ks[2], ks[3], CODE_SIZE, HIDDEN_SIZE)
    w3, b3 = linear(ks[4], ks[5], HIDDEN_SIZE, INPUT_SIZE)
    return {"w1": w1, "b1": b1, "w2": w2, "b2": b2, "w3": w3, "b3": b3}


if __name__ == "__main__":
    key = jax.random.PRNGKey(0)
    k_param, k_x = jax.random.split(key)

    params = init_params(k_param)
    B = 8
    x = jax.random.uniform(k_x, (B, INPUT_SIZE), jnp.float32)

    out = jax.block_until_ready(mautoencoder_forward(x, params))
    out_f32 = out.astype(jnp.float32)

    # Full-f32 reference (the original module's math).
    def ref_f32(x, p):
        h1 = jnp.maximum(x @ p["w1"] + p["b1"], 0.0)
        h2 = jnp.maximum(h1 @ p["w2"] + p["b2"], 0.0)
        return jax.nn.softmax(h2 @ p["w3"] + p["b3"], axis=-1)

    # Reference matching the kernel's matmul numerics (bf16 MXU inputs, f32 accum).
    def ref_bf16(x, p):
        c = lambda a: a.astype(jnp.bfloat16)
        h1 = jnp.maximum(jnp.dot(c(x), c(p["w1"]),
                                 preferred_element_type=jnp.float32) + p["b1"], 0.0)
        h2 = jnp.maximum(jnp.dot(c(h1), c(p["w2"]),
                                 preferred_element_type=jnp.float32) + p["b2"], 0.0)
        logits = jnp.dot(c(h2), c(p["w3"]),
                         preferred_element_type=jnp.float32) + p["b3"]
        return jax.nn.softmax(logits, axis=-1)

    assert out.shape == (B, INPUT_SIZE)
    assert out.dtype == jnp.bfloat16
    # Softmax rows sum to ~1 (bf16 output + approx reciprocal -> loose tol).
    assert jnp.allclose(jnp.sum(out_f32, axis=-1), 1.0, atol=5e-3), \
        float(jnp.max(jnp.abs(jnp.sum(out_f32, axis=-1) - 1.0)))
    # Check against the bf16-matmul-matched reference (bf16 output rounding).
    assert jnp.allclose(out_f32, ref_bf16(x, params), atol=1e-3), \
        float(jnp.max(jnp.abs(out_f32 - ref_bf16(x, params))))
    # Loose check against the pure-f32 module.
    assert jnp.allclose(out_f32, ref_f32(x, params), atol=2e-3), \
        float(jnp.max(jnp.abs(out_f32 - ref_f32(x, params))))

    print("KERNEL_OK")
</pallas_src>

<mosaic_0001>
module attributes {stable_mosaic.version = 11 : i64} {
  func.func @_mautoencoder_kernel(%arg0: i32, %arg1: memref<16x784xf32, #tpu.memory_space<vmem>>, %arg2: memref<784x128xbf16, #tpu.memory_space<vmem>>, %arg3: memref<1x128xf32, #tpu.memory_space<vmem>>, %arg4: memref<128x128xbf16, #tpu.memory_space<vmem>>, %arg5: memref<1x128xf32, #tpu.memory_space<vmem>>, %arg6: memref<128x896xbf16, #tpu.memory_space<vmem>>, %arg7: memref<1x896xf32, #tpu.memory_space<vmem>>, %arg8: memref<16x784xbf16, #tpu.memory_space<vmem>>) attributes {dimension_semantics = [#tpu.dimension_semantics<parallel>], iteration_bounds = array<i64: 1>, scalar_prefetch = 0 : i64, scratch_operands = 0 : i64, tpu.core_type = #tpu.core_type<tc>, window_params = [{transform_indices = @transform_0, window_bounds = array<i64: 16, 784>}, {pipeline_mode = #tpu.pipeline_mode<synchronous>, transform_indices = @transform_1, window_bounds = array<i64: 784, 128>}, {pipeline_mode = #tpu.pipeline_mode<synchronous>, transform_indices = @transform_2, window_bounds = array<i64: 1, 128>}, {pipeline_mode = #tpu.pipeline_mode<synchronous>, transform_indices = @transform_3, window_bounds = array<i64: 128, 128>}, {pipeline_mode = #tpu.pipeline_mode<synchronous>, transform_indices = @transform_4, window_bounds = array<i64: 1, 128>}, {pipeline_mode = #tpu.pipeline_mode<synchronous>, transform_indices = @transform_5, window_bounds = array<i64: 128, 896>}, {pipeline_mode = #tpu.pipeline_mode<synchronous>, transform_indices = @transform_6, window_bounds = array<i64: 1, 896>}, {transform_indices = @transform_7, window_bounds = array<i64: 16, 784>}]} {
    %c0 = arith.constant 0 : index
    %c0_0 = arith.constant 0 : index
    %0 = vector.load %arg1[%c0, %c0_0] : memref<16x784xf32, #tpu.memory_space<vmem>>, vector<16x784xf32>
    %1 = arith.truncf %0 : vector<16x784xf32> to vector<16x784xbf16>
    %c0_1 = arith.constant 0 : index
    %c0_2 = arith.constant 0 : index
    %2 = vector.load %arg2[%c0_1, %c0_2] : memref<784x128xbf16, #tpu.memory_space<vmem>>, vector<784x128xbf16>
    %cst = arith.constant dense<0.000000e+00> : vector<16x128xf32>
    %3 = tpu.matmul %1, %2, %cst {dimension_numbers = #tpu.dot_dimension_numbers<[1], [0], [0], [1], [0, 0, 1, 1], [], []>} : vector<16x784xbf16>, vector<784x128xbf16>, vector<16x128xf32> -> vector<16x128xf32>
    %c0_3 = arith.constant 0 : index
    %c0_4 = arith.constant 0 : index
    %4 = vector.load %arg3[%c0_3, %c0_4] : memref<1x128xf32, #tpu.memory_space<vmem>>, vector<1x128xf32>
    %5 = vector.broadcast %4 : vector<1x128xf32> to vector<16x128xf32>
    %6 = arith.addf %3, %5 : vector<16x128xf32>
    %cst_5 = arith.constant 0.000000e+00 : f32
    %7 = vector.broadcast %cst_5 : f32 to vector<16x128xf32>
    %8 = arith.maximumf %6, %7 : vector<16x128xf32>
    %9 = arith.truncf %8 : vector<16x128xf32> to vector<16x128xbf16>
    %c0_6 = arith.constant 0 : index
    %c0_7 = arith.constant 0 : index
    %10 = vector.load %arg4[%c0_6, %c0_7] : memref<128x128xbf16, #tpu.memory_space<vmem>>, vector<128x128xbf16>
    %cst_8 = arith.constant dense<0.000000e+00> : vector<16x128xf32>
    %11 = tpu.matmul %9, %10, %cst_8 {dimension_numbers = #tpu.dot_dimension_numbers<[1], [0], [0], [1], [0, 0, 1, 1], [], []>} : vector<16x128xbf16>, vector<128x128xbf16>, vector<16x128xf32> -> vector<16x128xf32>
    %c0_9 = arith.constant 0 : index
    %c0_10 = arith.constant 0 : index
    %12 = vector.load %arg5[%c0_9, %c0_10] : memref<1x128xf32, #tpu.memory_space<vmem>>, vector<1x128xf32>
    %13 = vector.broadcast %12 : vector<1x128xf32> to vector<16x128xf32>
    %14 = arith.addf %11, %13 : vector<16x128xf32>
    %cst_11 = arith.constant 0.000000e+00 : f32
    %15 = vector.broadcast %cst_11 : f32 to vector<16x128xf32>
    %16 = arith.maximumf %14, %15 : vector<16x128xf32>
    %17 = arith.truncf %16 : vector<16x128xf32> to vector<16x128xbf16>
    %c0_12 = arith.constant 0 : index
    %c0_13 = arith.constant 0 : index
    %18 = vector.load %arg6[%c0_12, %c0_13] : memref<128x896xbf16, #tpu.memory_space<vmem>>, vector<128x896xbf16>
    %cst_14 = arith.constant dense<0.000000e+00> : vector<16x896xf32>
    %19 = tpu.matmul %17, %18, %cst_14 {dimension_numbers = #tpu.dot_dimension_numbers<[1], [0], [0], [1], [0, 0, 1, 1], [], []>} : vector<16x128xbf16>, vector<128x896xbf16>, vector<16x896xf32> -> vector<16x896xf32>
    %c0_15 = arith.constant 0 : index
    %c0_16 = arith.constant 0 : index
    %20 = vector.load %arg7[%c0_15, %c0_16] : memref<1x896xf32, #tpu.memory_space<vmem>>, vector<1x896xf32>
    %21 = vector.broadcast %20 : vector<1x896xf32> to vector<16x896xf32>
    %22 = arith.addf %19, %21 : vector<16x896xf32>
    %cst_17 = arith.constant dense<0xFF800000> : vector<16xf32>
    %23 = vector.multi_reduction <maximumf>, %22, %cst_17 [1] : vector<16x896xf32> to vector<16xf32>
    %24 = vector.shape_cast %23 : vector<16xf32> to vector<16x1xf32>
    %25 = vector.broadcast %24 : vector<16x1xf32> to vector<16x896xf32>
    %26 = arith.subf %22, %25 : vector<16x896xf32>
    %27 = math.exp %26 : vector<16x896xf32>
    %cst_18 = arith.constant dense<0.000000e+00> : vector<16xf32>
    %28 = vector.multi_reduction <add>, %27, %cst_18 [1] : vector<16x896xf32> to vector<16xf32>
    %29 = vector.shape_cast %28 : vector<16xf32> to vector<16x1xf32>
    %30 = tpu.reciprocal %29 {approx = true} : vector<16x1xf32> -> vector<16x1xf32>
    %31 = vector.extract_strided_slice %27 {offsets = [0, 0], sizes = [16, 784], strides = [1, 1]} : vector<16x896xf32> to vector<16x784xf32>
    %32 = vector.broadcast %30 : vector<16x1xf32> to vector<16x784xf32>
    %33 = arith.mulf %31, %32 : vector<16x784xf32>
    %34 = arith.truncf %33 : vector<16x784xf32> to vector<16x784xbf16>
    %c0_19 = arith.constant 0 : index
    %c0_20 = arith.constant 0 : index
    %35 = vector.load %arg8[%c0_19, %c0_20] : memref<16x784xbf16, #tpu.memory_space<vmem>>, vector<16x784xbf16>
    tpu.vector_store %arg8[%c0_19, %c0_20], %34 {strides = array<i32>} : memref<16x784xbf16, #tpu.memory_space<vmem>>, vector<16x784xbf16>,
    return
  }
  func.func @transform_0(%arg0: i32) -> (i32, i32) {
    %c0_i32 = arith.constant 0 : i32
    %c0_i32_0 = arith.constant 0 : i32
    return %arg0, %c0_i32 : i32, i32
  }
  func.func @transform_1(%arg0: i32) -> (i32, i32) {
    %c0_i32 = arith.constant 0 : i32
    %c0_i32_0 = arith.constant 0 : i32
    %c0_i32_1 = arith.constant 0 : i32
    return %c0_i32, %c0_i32_0 : i32, i32
  }
  func.func @transform_2(%arg0: i32) -> (i32, i32) {
    %c0_i32 = arith.constant 0 : i32
    %c0_i32_0 = arith.constant 0 : i32
    %c0_i32_1 = arith.constant 0 : i32
    return %c0_i32, %c0_i32_0 : i32, i32
  }
  func.func @transform_3(%arg0: i32) -> (i32, i32) {
    %c0_i32 = arith.constant 0 : i32
    %c0_i32_0 = arith.constant 0 : i32
    %c0_i32_1 = arith.constant 0 : i32
    return %c0_i32, %c0_i32_0 : i32, i32
  }
  func.func @transform_4(%arg0: i32) -> (i32, i32) {
    %c0_i32 = arith.constant 0 : i32
    %c0_i32_0 = arith.constant 0 : i32
    %c0_i32_1 = arith.constant 0 : i32
    return %c0_i32, %c0_i32_0 : i32, i32
  }
  func.func @transform_5(%arg0: i32) -> (i32, i32) {
    %c0_i32 = arith.constant 0 : i32
    %c0_i32_0 = arith.constant 0 : i32
    %c0_i32_1 = arith.constant 0 : i32
    return %c0_i32, %c0_i32_0 : i32, i32
  }
  func.func @transform_6(%arg0: i32) -> (i32, i32) {
    %c0_i32 = arith.constant 0 : i32
    %c0_i32_0 = arith.constant 0 : i32
    %c0_i32_1 = arith.constant 0 : i32
    return %c0_i32, %c0_i32_0 : i32, i32
  }
  func.func @transform_7(%arg0: i32) -> (i32, i32) {
    %c0_i32 = arith.constant 0 : i32
    %c0_i32_0 = arith.constant 0 : i32
    return %arg0, %c0_i32 : i32, i32
  }
}

</mosaic_0001>

<bundles_post_ra>
// kernel: mautoencoder_forward.1
= control target key start
LH: loop header
LB: loop body
LE: loop exit
PB: predicated region body
PF: predicated region fallthrough
CT: control target
= control target key end

     0   :  { %v1875_v43 = vmov 0.0   ;;  %vm1876_vm0 = vmmov 0   ;;  %vm447_vm1 = vcmask 130048   ;;  %vm1429_vm2 = vcmask 125952   ;;  %s2357_s1 = inlined_call_operand.vmem [shape: bf16[784,128], index: 1, kind: input, shape index: {}]   ;;  %s2358_s0 = inlined_call_operand.vmem [shape: f32[16,784], index: 0, kind: input, shape index: {}]   ;;  %s2359_s3 = inlined_call_operand.vmem [shape: bf16[128,128], index: 3, kind: input, shape index: {}]   ;;  %s2360_s5 = inlined_call_operand.vmem [shape: bf16[128,896], index: 5, kind: input, shape index: {}]   ;;  %s2361_s2 = inlined_call_operand.vmem [shape: f32[1,128], index: 2, kind: input, shape index: {}]   ;;  %s2362_s4 = inlined_call_operand.vmem [shape: f32[1,128], index: 4, kind: input, shape index: {}]   ;;  %s2363_s6 = inlined_call_operand.vmem [shape: f32[1,896], index: 6, kind: input, shape index: {}]   ;;  %s2364_s7 = inlined_call_operand.vmem [shape: bf16[16,784], index: 7, kind: output, shape index: {}]  }
   0x1   :  { %v1706_v0 = vld [vmem:[%s2357_s1 + $0x40] sm:$0xff]   ;;  %v1710_v4 = vld [vmem:[%s2357_s1 + $0x48] sm:$0xff]   ;;  %v1714_v8 = vld [vmem:[%s2357_s1 + $0x50] sm:$0xff]  }
   0x2   :  { %v1707_v1 = vld [vmem:[%s2357_s1] sm:$0xff]   ;;  %1571 = vmatprep.subr.bf16.mxu0 %v1706_v0  ;;  %v1711_v5 = vld [vmem:[%s2357_s1 + $0x8] sm:$0xff]   ;;  %v1715_v9 = vld [vmem:[%s2357_s1 + $0x10] sm:$0xff]  }
   0x3   :  { %v1708_v2 = vld [vmem:[%s2357_s1 + $0xc0] sm:$0xff]   ;;  %1572 = vmatpush3.bf16.msra.mxu0 %v1707_v1  ;;  %v1712_v6 = vld [vmem:[%s2357_s1 + $0xc8] sm:$0xff]   ;;  %v1716_v10 = vld [vmem:[%s2357_s1 + $0xd0] sm:$0xff]  }
   0x4   :  { %v1709_v3 = vld [vmem:[%s2357_s1 + $0x80] sm:$0xff]   ;;  %1593 = vmatprep.subr.bf16.mxu1 %v1708_v2  ;;  %1573 = vmatprep.subr.bf16.mxu0 %v1710_v4  ;;  %v1713_v7 = vld [vmem:[%s2357_s1 + $0x88] sm:$0xff]   ;;  %v1717_v11 = vld [vmem:[%s2357_s1 + $0x90] sm:$0xff]  }
   0x5   :  { %1594 = vmatpush3.bf16.msra.mxu1 %v1709_v3  ;;  %v1718_v12 = vld [vmem:[%s2357_s1 + $0x58] sm:$0xff]   ;;  %v1722_v16 = vld [vmem:[%s2357_s1 + $0x60] sm:$0xff]   ;;  %v1726_v20 = vld [vmem:[%s2357_s1 + $0x68] sm:$0xff]  }
   0x6   :  { %1595 = vmatprep.subr.bf16.mxu1 %v1712_v6  ;;  %v1719_v13 = vld [vmem:[%s2357_s1 + $0x18] sm:$0xff]   ;;  %v1723_v17 = vld [vmem:[%s2357_s1 + $0x20] sm:$0xff]   ;;  %v1727_v21 = vld [vmem:[%s2357_s1 + $0x28] sm:$0xff]  }
   0x7   :  { %1574 = vmatpush3.bf16.msra.mxu0 %v1711_v5  ;;  %v1720_v14 = vld [vmem:[%s2357_s1 + $0xd8] sm:$0xff]   ;;  %v1724_v18 = vld [vmem:[%s2357_s1 + $0xe0] sm:$0xff]   ;;  %v1728_v22 = vld [vmem:[%s2357_s1 + $0xe8] sm:$0xff]  }
   0x8   :  { %1575 = vmatprep.subr.bf16.mxu0 %v1714_v8  ;;  %v1721_v15 = vld [vmem:[%s2357_s1 + $0x98] sm:$0xff]   ;;  %v1725_v19 = vld [vmem:[%s2357_s1 + $0xa0] sm:$0xff]   ;;  %v1729_v23 = vld [vmem:[%s2357_s1 + $0xa8] sm:$0xff]  }
   0x9   :  { %1596 = vmatpush3.bf16.msra.mxu1 %v1713_v7  ;;  %v1730_v24 = vld [vmem:[%s2357_s1 + $0x70] sm:$0xff]   ;;  %v1734_v28 = vld [vmem:[%s2357_s1 + $0x78] sm:$0xff]   ;;  %v28_v31 = vld [vmem:[%s2358_s0 + $0x8] sm:$0xff] }
   0xa   :  { %1597 = vmatprep.subr.bf16.mxu1 %v1716_v10  ;;  %v1731_v25 = vld [vmem:[%s2357_s1 + $0x30] sm:$0xff]   ;;  %v1735_v29 = vld [vmem:[%s2357_s1 + $0x38] sm:$0xff]   ;;  %v35_v32 = vld [vmem:[%s2358_s0 + $0x40] sm:$0xff] }
   0xb   :  { %1576 = vmatpush3.bf16.msra.mxu0 %v1715_v9  ;;  %v1732_v26 = vld [vmem:[%s2357_s1 + $0xf0] sm:$0xff]   ;;  %v1736_v30 = vld [vmem:[%s2357_s1 + $0xf8] sm:$0xff]   ;;  %v42_v33 = vpack.c.bf16 %v35_v32, %v28_v31  ;;  %v27_v35 = vld [vmem:[%s2358_s0] sm:$0xff] }
   0xc   :  { %1577 = vmatprep.subr.bf16.mxu0 %v1718_v12  ;;  %v1733_v27 = vld [vmem:[%s2357_s1 + $0xb0] sm:$0xff]   ;;  %v1737_v34 = vld [vmem:[%s2357_s1 + $0xb8] sm:$0xff]   ;;  %v1738_v38 = vld [vmem:[%s2357_s1 + $0x140] sm:$0xff]  }
   0xd   :  { %1598 = vmatpush3.bf16.msra.mxu1 %v1717_v11  ;;  %v34_v36 = vld [vmem:[%s2358_s0 + $0x38] sm:$0xff]  ;;  %483 = vmatprep.mubr.bf16.mxu0 %v42_v33  ;;  %v37_v40 = vld [vmem:[%s2358_s0 + $0x50] sm:$0xff]  ;;  %v1739_v42 = vld [vmem:[%s2357_s1 + $0x100] sm:$0xff]  }
   0xe   :  { %1599 = vmatprep.subr.bf16.mxu1 %v1720_v14  ;;  %v41_v37 = vpack.c.bf16 %v34_v36, %v27_v35  ;;  %v30_v39 = vld [vmem:[%s2358_s0 + $0x18] sm:$0xff]  ;;  %v29_v44 = vld [vmem:[%s2358_s0 + $0x10] sm:$0xff]  ;;  %v36_v45 = vld [vmem:[%s2358_s0 + $0x48] sm:$0xff] }
   0xf   :  { %1578 = vmatpush3.bf16.msra.mxu0 %v1719_v13  ;;  %v44_v41 = vpack.c.bf16 %v37_v40, %v30_v39  ;;  %v43_v46 = vpack.c.bf16 %v36_v45, %v29_v44  ;;  %v1740_v47 = vld [vmem:[%s2357_s1 + $0x148] sm:$0xff]   ;;  %v1742_v49 = vld [vmem:[%s2357_s1 + $0x150] sm:$0xff]   ;;  %v1744_v51 = vld [vmem:[%s2357_s1 + $0x158] sm:$0xff]  }
  0x10   :  { %1579 = vmatprep.subr.bf16.mxu0 %v1722_v16  ;;  %v1741_v48 = vld [vmem:[%s2357_s1 + $0x108] sm:$0xff]   ;;  %v1743_v50 = vld [vmem:[%s2357_s1 + $0x110] sm:$0xff]   ;;  %v1745_v52 = vld [vmem:[%s2357_s1 + $0x118] sm:$0xff]  }
  0x11   :  { %1600 = vmatpush3.bf16.msra.mxu1 %v1721_v15  ;;  %524 = vmatprep.mubr.bf16.mxu1 %v44_v41  ;;  %v1746_v53 = vld [vmem:[%s2357_s1 + $0x160] sm:$0xff]   ;;  %v1748_v55 = vld [vmem:[%s2357_s1 + $0x168] sm:$0xff]   ;;  %v33_v61 = vld [vmem:[%s2358_s0 + $0x30] sm:$0xff] }
  0x12   :  { %1601 = vmatprep.subr.bf16.mxu1 %v1724_v18  ;;  %v1747_v54 = vld [vmem:[%s2357_s1 + $0x120] sm:$0xff]   ;;  %v32_v57 = vld [vmem:[%s2358_s0 + $0x28] sm:$0xff]  ;;  %v1750_v63 = vld [vmem:[%s2357_s1 + $0x170] sm:$0xff]  }
  0x13   :  { %1580 = vmatpush3.bf16.msra.mxu0 %v1723_v17  ;;  %v1754_v56 = vld [vmem:[%s2357_s1 + $0x180] sm:$0xff]   ;;  %v1749_v59 = vld [vmem:[%s2357_s1 + $0x128] sm:$0xff]   ;;  %v1751_v1 = vld [vmem:[%s2357_s1 + $0x130] sm:$0xff]  }
  0x14   :  { %1581 = vmatprep.subr.bf16.mxu0 %v1726_v20  ;;  %v39_v58 = vld [vmem:[%s2358_s0 + $0x60] sm:$0xff]  ;;  %v40_v62 = vld [vmem:[%s2358_s0 + $0x68] sm:$0xff]  ;;  %v1752_v2 = vld [vmem:[%s2357_s1 + $0x178] sm:$0xff]  }
  0x15   :  { %1602 = vmatpush3.bf16.msra.mxu1 %v1725_v19  ;;  %v46_v60 = vpack.c.bf16 %v39_v58, %v32_v57  ;;  %v47_v0 = vpack.c.bf16 %v40_v62, %v33_v61  ;;  %v1753_v3 = vld [vmem:[%s2357_s1 + $0x138] sm:$0xff]   ;;  %v31_v4 = vld [vmem:[%s2358_s0 + $0x20] sm:$0xff]  ;;  %v1756_v8 = vld [vmem:[%s2359_s3 + $0x8] sm:$0xff]  }
  0x16   :  { %1603 = vmatprep.subr.bf16.mxu1 %v1728_v22  ;;  %v38_v5 = vld [vmem:[%s2358_s0 + $0x58] sm:$0xff]  ;;  %v1755_v7 = vld [vmem:[%s2359_s3] sm:$0xff]   ;;  %v1757_v9 = vld [vmem:[%s2359_s3 + $0x10] sm:$0xff]  }
  0x17   :  { %1582 = vmatpush3.bf16.msra.mxu0 %v1727_v21  ;;  %v45_v6 = vpack.c.bf16 %v38_v5, %v31_v4  ;;  %v1758_v10 = vld [vmem:[%s2359_s3 + $0x18] sm:$0xff]   ;;  %v1759_v11 = vld [vmem:[%s2359_s3 + $0x20] sm:$0xff]   ;;  %v1760_v12 = vld [vmem:[%s2359_s3 + $0x28] sm:$0xff]  }
  0x18   :  { %1583 = vmatprep.subr.bf16.mxu0 %v1730_v24  ;;  %v1761_v13 = vld [vmem:[%s2359_s3 + $0x30] sm:$0xff]   ;;  %v1762_v14 = vld [vmem:[%s2359_s3 + $0x38] sm:$0xff]   ;;  %v1765_v16 = vld [vmem:[%s2360_s5 + $0x4] ss:$28 sps:$4 sm:$0xff]  }
  0x19   :  { %1604 = vmatpush3.bf16.msra.mxu1 %v1729_v23  ;;  %v1763_v15 = vld [vmem:[%s2360_s5] ss:$28 sps:$4 sm:$0xff]   ;;  %v1768_v17 = vld [vmem:[%s2360_s5 + $0xc] ss:$28 sps:$4 sm:$0xff]   ;;  %v1769_v19 = vld [vmem:[%s2360_s5 + $0x38] ss:$28 sps:$4 sm:$0xff]  }
  0x1a   :  { %1605 = vmatprep.subr.bf16.mxu1 %v1732_v26  ;;  %v1771_v18 = vld [vmem:[%s2360_s5 + $0x3c] ss:$28 sps:$4 sm:$0xff]   ;;  %v1777_v20 = vld [vmem:[%s2360_s5 + $0x74] ss:$28 sps:$4 sm:$0xff]   ;;  %v1783_v22 = vld [vmem:[%s2360_s5 + $0xac] ss:$28 sps:$4 sm:$0xff]  }
  0x1b   :  { %1584 = vmatpush3.bf16.msra.mxu0 %v1731_v25  ;;  %v1775_v21 = vld [vmem:[%s2360_s5 + $0x70] ss:$28 sps:$4 sm:$0xff]   ;;  %v1781_v23 = vld [vmem:[%s2360_s5 + $0xa8] ss:$28 sps:$4 sm:$0xff]   ;;  %v1787_v25 = vld [vmem:[%s2360_s5 + $0xe0] ss:$28 sps:$4 sm:$0xff]  }
  0x1c   :  { %1585 = vmatprep.subr.bf16.mxu0 %v1734_v28  ;;  %v1789_v24 = vld [vmem:[%s2360_s5 + $0xe4] ss:$28 sps:$4 sm:$0xff]   ;;  %v1795_v26 = vld [vmem:[%s2360_s5 + $0x11c] ss:$28 sps:$4 sm:$0xff]   ;;  %v1786_v4 = vld [vmem:[%s2360_s5 + $0xb4] ss:$28 sps:$4 sm:$0xff]  }
  0x1d   :  { %1606 = vmatpush3.bf16.msra.mxu1 %v1733_v27  ;;  %v1793_v27 = vld [vmem:[%s2360_s5 + $0x118] ss:$28 sps:$4 sm:$0xff]   ;;  %v1766_v62 = vld [vmem:[%s2360_s5 + $0x8] ss:$28 sps:$4 sm:$0xff]   ;;  %v1784_v5 = vld [vmem:[%s2360_s5 + $0xb0] ss:$28 sps:$4 sm:$0xff]  }
  0x1e   :  { %1607 = vmatprep.subr.bf16.mxu1 %v1736_v30 }
  0x1f   :  { %1586 = vmatpush3.bf16.msra.mxu0 %v1735_v29  ;;  %v1439_v29 = vld [vmem:[%s2361_s2] ss:$0 sm:$0xff] }
  0x20   :  { %1615 = vmatprep.subr.bf16.mxu0 %v1738_v38 }
  0x21   :  { %1608 = vmatpush3.bf16.msra.mxu1 %v1737_v34 }
  0x22   :  { %1657 = vmatprep.subr.bf16.mxu1 %v1875_v43  ;;  %484 = vmatmul.mubr.bf16.vlgmr.msra.gmra.mrb[0].mxu0 %v41_v37 }
  0x23   :  { %1616 = vmatpush3.bf16.msra.mxu0 %v1739_v42  ;;  %565 = vmatprep.mubr.bf16.mxu0 %v46_v60 }
  0x24   :  { %525 = vmatmul.mubr.bf16.vlgmr.msra.gmra.mrb[0].mxu1 %v43_v46  ;;  %1617 = vmatprep.subr.bf16.mxu0 %v1740_v47 }
  0x25   :  { %1659 = vmatprep.mubr.msk.bf16.mxu1 %vm1876_vm0, %v1875_v43  ;;  %1658 = vmatpush3.bf16.msra.mxu1 %v1754_v56 }
  0x26   :  { %1663 = vmatprep.subr.bf16.mxu1 %v1875_v43 }
  0x27   :  { %1618 = vmatpush3.bf16.msra.mxu0 %v1741_v48 }
  0x28   :  { %1619 = vmatprep.subr.bf16.mxu0 %v1742_v49 }
  0x2b   :  { %1620 = vmatpush3.bf16.msra.mxu0 %v1743_v50 }
  0x2c   :  { %1621 = vmatprep.subr.bf16.mxu0 %v1744_v51  ;;  %1660 = vmatmul.mubr.msk.bf16.vlgmr.msra.gmra.mrb[4].mxu1 %vm447_vm1, %v47_v0  ;;  %v1774_v0 = vld [vmem:[%s2360_s5 + $0x44] ss:$28 sps:$4 sm:$0xff]  }
  0x2d   :  { %1679 = vmatprep.mubr.msk.bf16.mxu1 %vm1876_vm0, %v1875_v43  ;;  %1664 = vmatpush3.bf16.msra.mxu1 %v1755_v7  ;;  %v1790_v7 = vld [vmem:[%s2360_s5 + $0xe8] ss:$28 sps:$4 sm:$0xff]  }
  0x2e   :  { %1665 = vmatprep.subr.bf16.mxu1 %v1875_v43 }
  0x2f   :  { %1622 = vmatpush3.bf16.msra.mxu0 %v1745_v52 }
  0x30   :  { %1623 = vmatprep.subr.bf16.mxu0 %v1746_v53 }
  0x31   :  { %1666 = vmatpush3.bf16.msra.mxu1 %v1756_v8  ;;  %v1798_v8 = vld [vmem:[%s2360_s5 + $0x124] ss:$28 sps:$4 sm:$0xff]  }
  0x32   :  { %1667 = vmatprep.subr.bf16.mxu1 %v1875_v43 }
  0x33   :  { %1624 = vmatpush3.bf16.msra.mxu0 %v1747_v54 }
  0x34   :  { %1625 = vmatprep.subr.bf16.mxu0 %v1748_v55 }
  0x35   :  { %1668 = vmatpush3.bf16.msra.mxu1 %v1757_v9  ;;  %v1796_v9 = vld [vmem:[%s2360_s5 + $0x120] ss:$28 sps:$4 sm:$0xff]  }
  0x36   :  { %1669 = vmatprep.subr.bf16.mxu1 %v1875_v43 }
  0x37   :  { %1626 = vmatpush3.bf16.msra.mxu0 %v1749_v59 }
  0x38   :  { %1627 = vmatprep.subr.bf16.mxu0 %v1750_v63 }
  0x39   :  { %1670 = vmatpush3.bf16.msra.mxu1 %v1758_v10  ;;  %v1801_v10 = vld [vmem:[%s2360_s5 + $0x154] ss:$28 sps:$4 sm:$0xff]  }
  0x3a   :  { %1671 = vmatprep.subr.bf16.mxu1 %v1875_v43 }
  0x3b   :  { %1628 = vmatpush3.bf16.msra.mxu0 %v1751_v1  ;;  %v1772_v1 = vld [vmem:[%s2360_s5 + $0x40] ss:$28 sps:$4 sm:$0xff]  }
  0x3c   :  { %1629 = vmatprep.subr.bf16.mxu0 %v1752_v2  ;;  %v1780_v2 = vld [vmem:[%s2360_s5 + $0x7c] ss:$28 sps:$4 sm:$0xff]  }
  0x3d   :  { %1672 = vmatpush3.bf16.msra.mxu1 %v1759_v11  ;;  %v1804_v11 = vld [vmem:[%s2360_s5 + $0x15c] ss:$28 sps:$4 sm:$0xff]  }
  0x3e   :  { %1673 = vmatprep.subr.bf16.mxu1 %v1875_v43 }
  0x3f   :  { %1630 = vmatpush3.bf16.msra.mxu0 %v1753_v3  ;;  %v1778_v3 = vld [vmem:[%s2360_s5 + $0x78] ss:$28 sps:$4 sm:$0xff]  }
  0x40   :  { %1122 = vmatprep.subr.bf16.mxu0 %v1765_v16  ;;  %v1805_v16 = vld [vmem:[%s2360_s5 + $0x188] ss:$28 sps:$4 sm:$0xff]  }
  0x41   :  { %1674 = vmatpush3.bf16.msra.mxu1 %v1760_v12  ;;  %v1799_v12 = vld [vmem:[%s2360_s5 + $0x150] ss:$28 sps:$4 sm:$0xff]  }
  0x42   :  { %566 = vmatmul.mubr.bf16.vlgmr.msra.gmra.mrb[4].mxu0 %v45_v6  ;;  %1675 = vmatprep.subr.bf16.mxu1 %v1875_v43  ;;  %v1792_v6 = vld [vmem:[%s2360_s5 + $0xec] ss:$28 sps:$4 sm:$0xff]  }
  0x43   :  { %1123 = vmatpush1.bf16.msra.mxu0 %v1763_v15  ;;  %v1810_v15 = vld [vmem:[%s2360_s5 + $0x194] ss:$28 sps:$4 sm:$0xff]  }
  0x44   :  { %1124 = vmatprep.subr.bf16.mxu0 %v1771_v18  ;;  %v1813_v18 = vld [vmem:[%s2360_s5 + $0x14] ss:$28 sps:$4 sm:$0xff]  }
  0x45   :  { %1676 = vmatpush3.bf16.msra.mxu1 %v1761_v13  ;;  %v1802_v13 = vld [vmem:[%s2360_s5 + $0x158] ss:$28 sps:$4 sm:$0xff]  }
  0x46   :  { %1677 = vmatprep.subr.bf16.mxu1 %v1875_v43 }
  0x47   :  { %1125 = vmatpush1.bf16.msra.mxu0 %v1769_v19  ;;  %v1877_v19 = vmov 0  }
  0x48   :  { %1126 = vmatprep.subr.bf16.mxu0 %v1777_v20  ;;  %1154 = vmatprep.mubr.bf16.mxu0 %v1877_v19  ;;  %v1490_v20 = vld [vmem:[%s2362_s4] ss:$0 sm:$0xff] }
  0x49   :  { %1678 = vmatpush3.bf16.msra.mxu1 %v1762_v14  ;;  %v1807_v14 = vld [vmem:[%s2360_s5 + $0x18c] ss:$28 sps:$4 sm:$0xff]  }
  0x4a   :  { %1165 = vmatprep.subr.bf16.mxu1 %v1768_v17  ;;  %v1808_v17 = vld [vmem:[%s2360_s5 + $0x190] ss:$28 sps:$4 sm:$0xff]  }
  0x4b   :  { %1127 = vmatpush1.bf16.msra.mxu0 %v1775_v21 }
  0x4c   :  { %1128 = vmatprep.subr.bf16.mxu0 %v1783_v22 }
  0x4f   :  { %1129 = vmatpush1.bf16.msra.mxu0 %v1781_v23 }
  0x50   :  { %1130 = vmatprep.subr.bf16.mxu0 %v1789_v24 }
  0x53   :  { %1131 = vmatpush1.bf16.msra.mxu0 %v1787_v25 }
  0x54   :  { %1132 = vmatprep.subr.bf16.mxu0 %v1795_v26 }
  0x57   :  { %1133 = vmatpush1.bf16.msra.mxu0 %v1793_v27 }
  0x58   :  { %1134 = vmatprep.subr.bf16.mxu0 %v1801_v10 }
  0x5b   :  { %1135 = vmatpush1.bf16.msra.mxu0 %v1799_v12 }
  0x5c   :  { %1136 = vmatprep.subr.bf16.mxu0 %v1807_v14 }
  0x5f   :  { %1137 = vmatpush1.bf16.msra.mxu0 %v1805_v16 }
  0x60   :  { %1208 = vmatprep.subr.bf16.mxu0 %v1813_v18 }
  0xf5   :  { %v1587_v28 = vpop.f32.mrb[0].mxu0 }
  0xf6   :  { %v1588_v30 = vpop.f32.mrb[1].mxu0 }
  0xf7   :  { %v1589_v31 = vadd.f32 %v1588_v30, %v1587_v28  ;;  %v1590_v32 = vpop.f32.mrb[2].mxu0  ;;  %v1609_v33 = vpop.f32.mrb[0].mxu1  ;;  %v1814_v30 = vld [vmem:[%s2360_s5 + $0x18] ss:$28 sps:$4 sm:$0xff]  }
  0xf8   :  { %v1591_v34 = vpop.f32.mrb[3].mxu0  ;;  %v1610_v37 = vpop.f32.mrb[1].mxu1 }
  0xf9   :  { %v486_v35 = vadd.f32 %v1589_v31, %v1439_v29  ;;  %v1592_v36 = vadd.f32 %v1591_v34, %v1590_v32  ;;  %v1611_v38 = vadd.f32 %v1610_v37, %v1609_v33  ;;  %v1612_v39 = vpop.f32.mrb[2].mxu1  ;;  %v1817_v32 = vld [vmem:[%s2360_s5 + $0x4c] ss:$28 sps:$4 sm:$0xff]  }
  0xfa   :  { %v1613_v41 = vpop.f32.mrb[3].mxu1  ;;  %v1815_v33 = vld [vmem:[%s2360_s5 + $0x48] ss:$28 sps:$4 sm:$0xff]   ;;  %v1818_v34 = vld [vmem:[%s2360_s5 + $0x50] ss:$28 sps:$4 sm:$0xff]  }
  0xfb   :  { %v489_v40 = vadd.f32 %v1592_v36, %v1439_v29  ;;  %v527_v42 = vadd.f32 %v1611_v38, %v486_v35  ;;  %v1614_v44 = vadd.f32 %v1613_v41, %v1612_v39  ;;  %v1811_v29 = vld [vmem:[%s2360_s5 + $0x10] ss:$28 sps:$4 sm:$0xff]   ;;  %v1821_v35 = vld [vmem:[%s2360_s5 + $0x84] ss:$28 sps:$4 sm:$0xff]   ;;  %v1825_v38 = vld [vmem:[%s2360_s5 + $0xbc] ss:$28 sps:$4 sm:$0xff]  }
  0xfc   :  { %v1819_v36 = vld [vmem:[%s2360_s5 + $0x80] ss:$28 sps:$4 sm:$0xff]   ;;  %v1822_v37 = vld [vmem:[%s2360_s5 + $0x88] ss:$28 sps:$4 sm:$0xff]   ;;  %v1823_v39 = vld [vmem:[%s2360_s5 + $0xb8] ss:$28 sps:$4 sm:$0xff]  }
  0xfd   :  { %v530_v45 = vadd.f32 %v1614_v44, %v489_v40  ;;  %v1826_v40 = vld [vmem:[%s2360_s5 + $0xc0] ss:$28 sps:$4 sm:$0xff]   ;;  %v1829_v41 = vld [vmem:[%s2360_s5 + $0xf4] ss:$28 sps:$4 sm:$0xff]  }
  0xfe   :  { %v1830_v44 = vld [vmem:[%s2360_s5 + $0xf8] ss:$28 sps:$4 sm:$0xff]  }
  0xff   :  { %v608_v46 = vpop.f32.mrb[4].mxu1 }
 0x100   :  { %v1661_v47 = vpop.f32.mrb[5].mxu1 }
 0x101   :  { %v611_v48 = vpop.f32.mrb[6].mxu1  ;;  %v1834_v47 = vld [vmem:[%s2360_s5 + $0x130] ss:$28 sps:$4 sm:$0xff]  }
 0x102   :  { %v1662_v49 = vpop.f32.mrb[7].mxu1 }
 0x103   :  { %v1835_v49 = vld [vmem:[%s2360_s5 + $0x160] ss:$28 sps:$4 sm:$0xff]  }
 0x115   :  { %v1631_v50 = vpop.f32.mrb[4].mxu0 }
 0x116   :  { %v1632_v51 = vpop.f32.mrb[5].mxu0 }
 0x117   :  { %v1633_v52 = vadd.f32 %v1632_v51, %v1631_v50  ;;  %v1634_v53 = vpop.f32.mrb[6].mxu0  ;;  %v1838_v50 = vld [vmem:[%s2360_s5 + $0x168] ss:$28 sps:$4 sm:$0xff]   ;;  %v1841_v51 = vld [vmem:[%s2360_s5 + $0x19c] ss:$28 sps:$4 sm:$0xff]  }
 0x118   :  { %v1635_v54 = vpop.f32.mrb[7].mxu0 }
 0x119   :  { %v568_v55 = vadd.f32 %v1633_v52, %v527_v42  ;;  %v1636_v56 = vadd.f32 %v1635_v54, %v1634_v53  ;;  %v1827_v42 = vld [vmem:[%s2360_s5 + $0xf0] ss:$28 sps:$4 sm:$0xff]   ;;  %v1839_v52 = vld [vmem:[%s2360_s5 + $0x198] ss:$28 sps:$4 sm:$0xff]   ;;  %v1842_v53 = vld [vmem:[%s2360_s5 + $0x1a0] ss:$28 sps:$4 sm:$0xff]  }
 0x11b   :  { %v609_v57 = vadd.f32 %v608_v46, %v568_v55  ;;  %v571_v58 = vadd.f32 %v1636_v56, %v530_v45  ;;  %v1833_v45 = vld [vmem:[%s2360_s5 + $0x12c] ss:$28 sps:$4 sm:$0xff]  }
 0x11c   :  { %v1831_v46 = vld [vmem:[%s2360_s5 + $0x128] ss:$28 sps:$4 sm:$0xff]  }
 0x11d   :  { %v612_v59 = vadd.f32 %v611_v48, %v571_v58  ;;  %v615_v60 = vmax.f32 %v609_v57, 0.0  ;;  %v1837_v48 = vld [vmem:[%s2360_s5 + $0x164] ss:$28 sps:$4 sm:$0xff]  }
 0x11f   :  { %v616_v61 = vmax.f32 %v612_v59, 0.0 }
 0x121   :  { %v617_v63 = vpack.c.bf16 %v616_v61, %v615_v60 }
 0x123   :  { %1680 = vmatmul.mubr.bf16.vlgmr.msra.gmra.mrb[8].mxu1 %v617_v63 }
 0x124   :  { %1166 = vmatpush1.bf16.msra.mxu1 %v1766_v62  ;;  %1197 = vmatprep.mubr.bf16.mxu1 %v1877_v19  ;;  %v799_v62 = vlaneseq }
 0x125   :  { %1167 = vmatprep.subr.bf16.mxu1 %v1774_v0 }
 0x126   :  { %v800_v63 = vshrl.u32 %v799_v62, 7 }
 0x128   :  { %1168 = vmatpush1.bf16.msra.mxu1 %v1772_v1  ;;  %v801_v0 = vsub.s32 0, %v800_v63  ;;  %v809_v1 = vsub.s32 2, %v800_v63  ;;  %v825_v10 = vsub.s32 6, %v800_v63 }
 0x129   :  { %1169 = vmatprep.subr.bf16.mxu1 %v1780_v2  ;;  %v805_v2 = vsub.s32 1, %v800_v63 }
 0x12c   :  { %1170 = vmatpush1.bf16.msra.mxu1 %v1778_v3  ;;  %v813_v3 = vsub.s32 3, %v800_v63 }
 0x12d   :  { %1171 = vmatprep.subr.bf16.mxu1 %v1786_v4 }
 0x130   :  { %1172 = vmatpush1.bf16.msra.mxu1 %v1784_v5 }
 0x131   :  { %1173 = vmatprep.subr.bf16.mxu1 %v1792_v6  ;;  %v817_v6 = vsub.s32 4, %v800_v63 }
 0x134   :  { %1174 = vmatpush1.bf16.msra.mxu1 %v1790_v7 }
 0x135   :  { %1175 = vmatprep.subr.bf16.mxu1 %v1798_v8 }
 0x138   :  { %1176 = vmatpush1.bf16.msra.mxu1 %v1796_v9  ;;  %v821_v9 = vsub.s32 5, %v800_v63 }
 0x139   :  { %1177 = vmatprep.subr.bf16.mxu1 %v1804_v11 }
 0x13c   :  { %1178 = vmatpush1.bf16.msra.mxu1 %v1802_v13 }
 0x13d   :  { %1179 = vmatprep.subr.bf16.mxu1 %v1810_v15 }
 0x140   :  { %1180 = vmatpush1.bf16.msra.mxu1 %v1808_v17 }
 0x141   :  { %1683 = vmatprep.subr.bf16.mxu1 %v1875_v43 }
 0x1f6   :  { %v723_v21 = vpop.f32.mrb[8].mxu1 }
 0x1f7   :  { %v724_v22 = vadd.f32 %v1490_v20, %v723_v21  ;;  %v1681_v23 = vpop.f32.mrb[9].mxu1 }
 0x1f8   :  { %v726_v24 = vpop.f32.mrb[10].mxu1 }
 0x1f9   :  { %v727_v25 = vadd.f32 %v1490_v20, %v726_v24  ;;  %v1682_v26 = vpop.f32.mrb[11].mxu1  ;;  %v730_v27 = vmax.f32 %v724_v22, 0.0 }
 0x1fb   :  { %v731_v28 = vmax.f32 %v727_v25, 0.0 }
 0x1fd   :  { %v732_v31 = vpack.c.bf16 %v731_v28, %v730_v27 }
 0x1ff   :  { %1155 = vmatmul.mubr.bf16.vlgmr.msra.gmra.mrb[8].mxu0 %v732_v31  ;;  %1198 = vmatmul.mubr.bf16.vlgmr.msra.gmra.mrb[12].mxu1 %v732_v31 }
 0x200   :  { %1209 = vmatpush1.bf16.msra.mxu0 %v1811_v29  ;;  %1684 = vmatpush3.bf16.msra.mxu1 %v1814_v30 }
 0x201   :  { %1210 = vmatprep.subr.bf16.mxu0 %v1817_v32  ;;  %1685 = vmatprep.subr.bf16.mxu1 %v1875_v43 }
 0x202   :  { %1240 = vmatprep.mubr.bf16.mxu0 %v1877_v19  ;;  %1699 = vmatprep.mubr.msk.bf16.mxu1 %vm1876_vm0, %v1875_v43 }
 0x204   :  { %1211 = vmatpush1.bf16.msra.mxu0 %v1815_v33  ;;  %1686 = vmatpush3.bf16.msra.mxu1 %v1818_v34 }
 0x205   :  { %1212 = vmatprep.subr.bf16.mxu0 %v1821_v35  ;;  %1687 = vmatprep.subr.bf16.mxu1 %v1875_v43 }
 0x208   :  { %1213 = vmatpush1.bf16.msra.mxu0 %v1819_v36  ;;  %1688 = vmatpush3.bf16.msra.mxu1 %v1822_v37 }
 0x209   :  { %1214 = vmatprep.subr.bf16.mxu0 %v1825_v38  ;;  %1689 = vmatprep.subr.bf16.mxu1 %v1875_v43 }
 0x20c   :  { %1215 = vmatpush1.bf16.msra.mxu0 %v1823_v39  ;;  %1690 = vmatpush3.bf16.msra.mxu1 %v1826_v40 }
 0x20d   :  { %1216 = vmatprep.subr.bf16.mxu0 %v1829_v41  ;;  %1691 = vmatprep.subr.bf16.mxu1 %v1875_v43 }
 0x210   :  { %1217 = vmatpush1.bf16.msra.mxu0 %v1827_v42  ;;  %1692 = vmatpush3.bf16.msra.mxu1 %v1830_v44 }
 0x211   :  { %1218 = vmatprep.subr.bf16.mxu0 %v1833_v45  ;;  %1693 = vmatprep.subr.bf16.mxu1 %v1875_v43 }
 0x214   :  { %1219 = vmatpush1.bf16.msra.mxu0 %v1831_v46  ;;  %1694 = vmatpush3.bf16.msra.mxu1 %v1834_v47 }
 0x215   :  { %1220 = vmatprep.subr.bf16.mxu0 %v1837_v48  ;;  %1695 = vmatprep.subr.bf16.mxu1 %v1875_v43 }
 0x218   :  { %1221 = vmatpush1.bf16.msra.mxu0 %v1835_v49  ;;  %1696 = vmatpush3.bf16.msra.mxu1 %v1838_v50 }
 0x219   :  { %1222 = vmatprep.subr.bf16.mxu0 %v1841_v51  ;;  %1697 = vmatprep.subr.bf16.mxu1 %v1875_v43  ;;  %v797_v43 = vld [vmem:[%s2363_s6] sm:$0xff] }
 0x21a   :  { %v802_v4 = vrot.slane %v797_v43, %v801_v0  ;;  %v810_v5 = vrot.slane %v797_v43, %v809_v1  ;;  %v806_v7 = vrot.slane %v797_v43, %v805_v2  ;;  %v814_v8 = vrot.slane %v797_v43, %v813_v3 }
 0x21b   :  { %v818_v13 = vrot.slane %v797_v43, %v817_v6  ;;  %v822_v16 = vrot.slane %v797_v43, %v821_v9  ;;  %v826_v19 = vrot.slane %v797_v43, %v825_v10 }
 0x21c   :  { %1223 = vmatpush1.bf16.msra.mxu0 %v1839_v52  ;;  %1698 = vmatpush3.bf16.msra.mxu1 %v1842_v53 }
 0x21f   :  { %1241 = vmatmul.mubr.bf16.vlgmr.msra.gmra.mrb[12].mxu0 %v732_v31  ;;  %1700 = vmatmul.mubr.bf16.vlgmr.msra.gmra.mrb[16].mxu1 %v732_v31 }
 0x2d2   :  { %v1156_v54 = vpop.f32.mrb[8].mxu0  ;;  %v1199_v55 = vpop.f32.mrb[12].mxu1 }
 0x2d3   :  { %v1158_v56 = vpop.f32.mrb[9].mxu0  ;;  %v1201_v57 = vpop.f32.mrb[13].mxu1  ;;  %v1157_v11 = vadd.f32 %v1156_v54, %v802_v4  ;;  %v1200_v12 = vadd.f32 %v1199_v55, %v810_v5 }
 0x2d4   :  { %v1160_v58 = vpop.f32.mrb[10].mxu0  ;;  %v1203_v59 = vpop.f32.mrb[14].mxu1  ;;  %v1159_v14 = vadd.f32 %v1158_v56, %v806_v7  ;;  %v1202_v15 = vadd.f32 %v1201_v57, %v814_v8 }
 0x2d5   :  { %v1162_v60 = vpop.f32.mrb[11].mxu0  ;;  %v1205_v61 = vpop.f32.mrb[15].mxu1  ;;  %v1161_v17 = vadd.f32 %v1160_v58, %v802_v4  ;;  %v1204_v18 = vadd.f32 %v1203_v59, %v810_v5  ;;  %v1292_v22 = vmax.f32 %v1157_v11, %v1200_v12 }
 0x2d6   :  { %v1163_v23 = vadd.f32 %v1162_v60, %v806_v7  ;;  %v1206_v24 = vadd.f32 %v1205_v61, %v814_v8  ;;  %v1293_v28 = vmax.f32 %v1159_v14, %v1202_v15 }
 0x2d7   :  { %v1300_v32 = vmax.f32 %v1161_v17, %v1204_v18 }
 0x2d8   :  { %v1301_v40 = vmax.f32 %v1163_v23, %v1206_v24 }
 0x2f2   :  { %v1242_v20 = vpop.f32.mrb[12].mxu0  ;;  %v1285_v21 = vpop.f32.mrb[16].mxu1 }
 0x2f3   :  { %v1243_v25 = vadd.f32 %v1242_v20, %v818_v13  ;;  %v1244_v26 = vpop.f32.mrb[13].mxu0  ;;  %v1701_v27 = vpop.f32.mrb[17].mxu1  ;;  %v1286_v34 = vadd.f32 %v1285_v21, %v826_v19 }
 0x2f4   :  { %v1245_v29 = vadd.f32 %v1244_v26, %v822_v16  ;;  %v1246_v30 = vpop.f32.mrb[14].mxu0  ;;  %v1288_v31 = vpop.f32.mrb[18].mxu1 }
 0x2f5   :  { %v1294_v33 = vmax.f32 %v1292_v22, %v1243_v25  ;;  %v1247_v35 = vadd.f32 %v1246_v30, %v818_v13  ;;  %v1248_v36 = vpop.f32.mrb[15].mxu0  ;;  %v1702_v37 = vpop.f32.mrb[19].mxu1  ;;  %v1289_v42 = vadd.f32 %v1288_v31, %v826_v19 }
 0x2f6   :  { %v1249_v38 = vadd.f32 %v1248_v36, %v822_v16  ;;  %v1295_v39 = vmax.f32 %v1293_v28, %v1245_v29 }
 0x2f7   :  { %v1302_v41 = vmax.f32 %v1300_v32, %v1247_v35  ;;  %v1296_v44 = vmax.f32 %v1294_v33, %v1286_v34 }
 0x2f8   :  { %v1303_v46 = vmax.f32 %v1301_v40, %v1249_v38 }
 0x2f9   :  { %v1304_v45 = vmax.f32 %v1302_v41, %v1289_v42  ;;  %v1297_v47 = vmax.f32 %v1296_v44, %v1295_v39 }
 0x2fb   :  { %1298 = vmax.xlane.f32.xlu0 %v1297_v47  ;;  %v1305_v48 = vmax.f32 %v1304_v45, %v1303_v46 }
 0x2ff   :  { %1306 = vmax.xlane.f32.xlu0 %v1305_v48 }
 0x388   :  { %v1299_v49 = vpop.xlane.xlu0 %1298 }
 0x389   :  { %v1308_v50 = vsub.f32 %v1157_v11, %v1299_v49  ;;  %v1309_v51 = vsub.f32 %v1159_v14, %v1299_v49  ;;  %v1310_v52 = vsub.f32 %v1200_v12, %v1299_v49  ;;  %v1311_v53 = vsub.f32 %v1202_v15, %v1299_v49 }
 0x38a   :  { %v1312_v62 = vsub.f32 %v1243_v25, %v1299_v49  ;;  %v1313_v3 = vsub.f32 %v1245_v29, %v1299_v49  ;;  %v1314_v6 = vsub.f32 %v1286_v34, %v1299_v49 }
 0x38b   :  { %v1322_v54 = vmul.f32 1.442695, %v1308_v50  ;;  %v1324_v55 = vmul.f32 1.442695, %v1309_v51  ;;  %v1326_v56 = vmul.f32 1.442695, %v1310_v52 }
 0x38c   :  { %v1307_v57 = vpop.xlane.xlu0 %1306  ;;  %v1328_v63 = vmul.f32 1.442695, %v1311_v53  ;;  %v1330_v7 = vmul.f32 1.442695, %v1312_v62  ;;  %v1332_v10 = vmul.f32 1.442695, %v1313_v3 }
 0x38d   :  { %1843 = vpow2.f32 %v1322_v54  ;;  %v1315_v58 = vsub.f32 %v1161_v17, %v1307_v57  ;;  %v1316_v59 = vsub.f32 %v1163_v23, %v1307_v57  ;;  %v1317_v60 = vsub.f32 %v1204_v18, %v1307_v57 }
 0x38e   :  { %1845 = vpow2.f32 %v1324_v55  ;;  %v1318_v61 = vsub.f32 %v1206_v24, %v1307_v57  ;;  %v1319_v43 = vsub.f32 %v1247_v35, %v1307_v57  ;;  %v1320_v4 = vsub.f32 %v1249_v38, %v1307_v57 }
 0x38f   :  { %v1336_v0 = vmul.f32 1.442695, %v1315_v58  ;;  %v1338_v1 = vmul.f32 1.442695, %v1316_v59  ;;  %1847 = vpow2.f32 %v1326_v56  ;;  %v1340_v2 = vmul.f32 1.442695, %v1317_v60 }
 0x390   :  { %v1342_v5 = vmul.f32 1.442695, %v1318_v61  ;;  %v1344_v8 = vmul.f32 1.442695, %v1319_v43  ;;  %v1321_v9 = vsub.f32 %v1289_v42, %v1307_v57  ;;  %v1346_v11 = vmul.f32 1.442695, %v1320_v4 }
 0x391   :  { %1849 = vpow2.f32 %v1336_v0  ;;  %v1334_v13 = vmul.f32 1.442695, %v1314_v6 }
 0x392   :  { %1851 = vpow2.f32 %v1338_v1  ;;  %v1348_v15 = vmul.f32 1.442695, %v1321_v9 }
 0x393   :  { %1853 = vpow2.f32 %v1328_v63 }
 0x394   :  { %1855 = vpow2.f32 %v1340_v2 }
 0x395   :  { %1857 = vpow2.f32 %v1342_v5 }
 0x396   :  { %1859 = vpow2.f32 %v1330_v7 }
 0x397   :  { %v1844_v12 = vpop.eup %1843  ;;  %1861 = vpow2.f32 %v1344_v8 }
 0x398   :  { %v1846_v14 = vpop.eup %1845  ;;  %1863 = vpow2.f32 %v1332_v10 }
 0x399   :  { %v1350_v16 = vadd.f32 %v1846_v14, %v1844_v12  ;;  %v1848_v17 = vpop.eup %1847  ;;  %1865 = vpow2.f32 %v1346_v11 }
 0x39a   :  { %1867 = vpow2.f32 %v1334_v13 }
 0x39b   :  { %v1850_v18 = vpop.eup %1849  ;;  %v1351_v19 = vadd.f32 %v1848_v17, %v1350_v16  ;;  %1869 = vpow2.f32 %v1348_v15 }
 0x39c   :  { %v1852_v20 = vpop.eup %1851 }
 0x39d   :  { %v1854_v21 = vpop.eup %1853  ;;  %v1358_v22 = vadd.f32 %v1852_v20, %v1850_v18 }
 0x39e   :  { %v1856_v23 = vpop.eup %1855  ;;  %v1352_v24 = vadd.f32 %v1854_v21, %v1351_v19 }
 0x39f   :  { %v1359_v25 = vadd.f32 %v1856_v23, %v1358_v22  ;;  %v1858_v26 = vpop.eup %1857 }
 0x3a0   :  { %v1860_v27 = vpop.eup %1859 }
 0x3a1   :  { %v1360_v28 = vadd.f32 %v1858_v26, %v1359_v25  ;;  %v1862_v29 = vpop.eup %1861  ;;  %v1353_v30 = vadd.f32 %v1860_v27, %v1352_v24 }
 0x3a2   :  { %v1864_v31 = vpop.eup %1863 }
 0x3a3   :  { %v1361_v32 = vadd.f32 %v1862_v29, %v1360_v28  ;;  %v1866_v33 = vpop.eup %1865  ;;  %v1354_v34 = vadd.f32 %v1864_v31, %v1353_v30 }
 0x3a4   :  { %v1868_v35 = vpop.eup %1867 }
 0x3a5   :  { %v1362_v36 = vadd.f32 %v1866_v33, %v1361_v32  ;;  %v1355_v37 = vadd.f32 %v1868_v35, %v1354_v34  ;;  %v1870_v38 = vpop.eup %1869 }
 0x3a7   :  { %1356 = vadd.xlane.f32.xlu1 %v1355_v37  ;;  %v1363_v39 = vadd.f32 %v1870_v38, %v1362_v36 }
 0x3ab   :  { %1364 = vadd.xlane.f32.xlu1 %v1363_v39 }
 0x434   :  { %v1357_v40 = vpop.xlane.xlu1 %1356 }
 0x435   :  { %1871 = vrcp.f32 %v1357_v40 }
 0x438   :  { %v1365_v41 = vpop.xlane.xlu1 %1364 }
 0x439   :  { %1873 = vrcp.f32 %v1365_v41 }
 0x43f   :  { %v1872_v42 = vpop.eup %1871 }
 0x440   :  { %v1368_v44 = vmul.f32 %v1872_v42, %v1844_v12  ;;  %v1369_v45 = vmul.f32 %v1872_v42, %v1846_v14  ;;  %v1370_v46 = vmul.f32 %v1872_v42, %v1848_v17  ;;  %v1371_v47 = vmul.f32 %v1872_v42, %v1854_v21 }
 0x441   :  { %v1372_v48 = vmul.f32 %v1872_v42, %v1860_v27  ;;  %v1373_v49 = vmul.f32 %v1872_v42, %v1864_v31  ;;  %v1374_v50 = vmul.f32 %v1872_v42, %v1868_v35 }
 0x442   :  { %v1563_v51 = vpack.c.bf16 %v1369_v45, %v1368_v44  ;;  %v1564_v52 = vpack.c.bf16 %v1371_v47, %v1370_v46 }
 0x443   :  { %v1874_v53 = vpop.eup %1873  ;;  %v1565_v54 = vpack.c.bf16 %v1373_v49, %v1372_v48  ;;  %v1566_v55 = vpack.c.bf16 %v1374_v50, %v1374_v50 }
 0x444   :  { %1426 = vst [vmem:[%s2364_s7] sm:$0xff] %v1563_v51  ;;  %1427 = vst [vmem:[%s2364_s7 + $0x8] sm:$0xff] %v1564_v52  ;;  %v1375_v56 = vmul.f32 %v1874_v53, %v1850_v18  ;;  %v1376_v57 = vmul.f32 %v1874_v53, %v1852_v20  ;;  %v1377_v58 = vmul.f32 %v1874_v53, %v1856_v23 }
 0x445   :  { %v1378_v59 = vmul.f32 %v1874_v53, %v1858_v26  ;;  %1428 = vst [vmem:[%s2364_s7 + $0x10] sm:$0xff] %v1565_v54  ;;  %1430 = vst.msk [vmem:[%s2364_s7 + $0x18] sm:$0xf] %vm1429_vm2, %v1566_v55  ;;  %v1379_v60 = vmul.f32 %v1874_v53, %v1862_v29  ;;  %v1380_v61 = vmul.f32 %v1874_v53, %v1866_v33 }
 0x446   :  { %v1381_v62 = vmul.f32 %v1874_v53, %v1870_v38  ;;  %v1567_v63 = vpack.c.bf16 %v1376_v57, %v1375_v56 }
 0x447   :  { %v1568_v0 = vpack.c.bf16 %v1378_v59, %v1377_v58  ;;  %v1569_v1 = vpack.c.bf16 %v1380_v61, %v1379_v60 }
 0x448   :  { %v1570_v43 = vpack.c.bf16 %v1381_v62, %v1381_v62  ;;  %1431 = vst [vmem:[%s2364_s7 + $0x1c] sm:$0xff] %v1567_v63 }
 0x449   :  { %1432 = vst [vmem:[%s2364_s7 + $0x24] sm:$0xff] %v1568_v0  ;;  %1433 = vst [vmem:[%s2364_s7 + $0x2c] sm:$0xff] %v1569_v1 }
 0x44a   :  { %1434 = vst.msk [vmem:[%s2364_s7 + $0x34] sm:$0xf] %vm1429_vm2, %v1570_v43 }

</bundles_post_ra>
